<compile_context>
chip_gen: v7x
topology: tpu7x:2x2x1
jax: 0.10.0
libtpu: 0.0.40
codegen_flags: <defaults>
</compile_context>

<pallas_src>
import jax
import jax.numpy as jnp
from jax.experimental import pallas as pl
from jax.experimental.pallas import tpu as pltpu


def _round_up(x, m):
    return ((x + m - 1) // m) * m


def _pick_block_b(B, N, target_rows=256):
    """Largest divisor TB of B with TB*N <= target_rows, preferring >=2 grid
    steps so the parallel batch axis can still shard across v7x's 2 TCs."""
    cands = [tb for tb in range(1, B + 1) if B % tb == 0 and tb * N <= target_rows]
    if not cands:
        return 1
    multi = [tb for tb in cands if B // tb >= 2]
    return max(multi) if multi else max(cands)


def _make_dcgcn_kernel(layers, self_loop, D, h, TB, N, D_pad, compute_dtype):
    """Build the kernel body for a fixed number of GCN sub-layers."""
    rows = TB * N

    def cast(v):
        return v if compute_dtype is None else v.astype(compute_dtype)

    def mm(a, b):
        # 2-D matmul on the MXU, f32 accumulation.
        return jnp.dot(cast(a), cast(b), preferred_element_type=jnp.float32)

    def bmm(a, b):
        # batched adjacency matmul over the TB axis, f32 accumulation.
        return jnp.einsum("bij,bjd->bid", cast(a), cast(b),
                          preferred_element_type=jnp.float32)

    def kernel(adj_ref, x_ref, *refs):
        # refs = (w_0, b_0, ..., w_{L-1}, b_{L-1}, w_out, b_out,
        #         out_ref, cache_ref, acache_ref)
        w_refs = [refs[2 * l] for l in range(layers)]
        b_refs = [refs[2 * l + 1] for l in range(layers)]
        w_out_ref = refs[2 * layers]
        b_out_ref = refs[2 * layers + 1]
        out_ref = refs[2 * layers + 2]
        cache_ref = refs[2 * layers + 3]    # [TB, N, D + layers*h]  features
        acache_ref = refs[2 * layers + 4]   # [TB, N, D + layers*h]  adj @ features

        adj = adj_ref[...]                  # [TB, N, N]
        x = x_ref[...]                      # [TB, N, D]

        # denom = adj.sum(2, keepdims) + 1; reciprocal hoisted out of the loop.
        inv_denom = 1.0 / (jnp.sum(adj, axis=2, keepdims=True) + 1.0)  # [TB,N,1]

        # Seed the dense caches (block 0 = the input features).
        cache_ref[:, :, 0:D] = x
        acache_ref[:, :, 0:D] = bmm(adj, x)

        prev = x
        for l in range(layers):
            in_dim = D + l * h
            if l > 0:
                # Incremental Ax: only the block added last layer is new.
                acache_ref[:, :, D + (l - 1) * h : D + l * h] = bmm(adj, prev)

            w = w_refs[l][...]              # [in_dim, h] (stored pre-transposed)
            b = b_refs[l][...]              # [1, h]

            a_part = acache_ref[:, :, 0:in_dim]          # adj @ outputs
            if self_loop:
                # Linear(Ax) + Linear(outputs) == (Ax + outputs) @ w + 2*b
                operand = a_part + cache_ref[:, :, 0:in_dim]
                bias = 2.0 * b
            else:
                operand = a_part
                bias = b

            AxW = mm(operand.reshape(rows, in_dim), w) + bias      # [rows, h]
            AxW = AxW.reshape(TB, N, h) * inv_denom
            gAxW = jnp.maximum(AxW, 0.0)                           # relu
            # TODO(synk): nn.Dropout on gAxW is identity here (inference).
            cache_ref[:, :, D + l * h : D + (l + 1) * h] = gAxW
            prev = gAxW

        # concat(output_list) == the contiguous gAxW region; add residual x.
        gcn = cache_ref[:, :, D : D + layers * h] + x              # [TB, N, D]
        out2d = mm(gcn.reshape(rows, D), w_out_ref[...]) + b_out_ref[...]
        out_ref[...] = out2d.reshape(TB, N, D_pad).astype(out_ref.dtype)

    return kernel


def dcgcn_forward(adj, x, params, *, self_loop=True, block_b=None,
                  compute_dtype=None):
    """Pallas DCGCN forward.

    adj: [B, N, N] float32, x: [B, N, mem_dim] float32
    params: dict with 'layer_weights' (list of [mem_dim + l*head_dim, head_dim]),
            'layer_biases' (list of [1, head_dim]),
            'w_out' [mem_dim, mem_dim], 'b_out' [1, mem_dim].
    compute_dtype: None (f32) or jnp.bfloat16 for MXU inputs on v6e/v7x.
    """
    B, N, D = x.shape
    layers = len(params["layer_weights"])
    assert D % layers == 0, "mem_dim must be divisible by layers"
    h = D // layers
    for l, w in enumerate(params["layer_weights"]):
        assert w.shape == (D + h * l, h), f"bad weight shape at layer {l}"

    TB = block_b if block_b is not None else _pick_block_b(B, N)
    assert B % TB == 0, "block_b must divide the batch size"

    # Lane-dense output: pad the output projection to a multiple of 128 lanes
    # so the final store is a full (unmasked) vector store.
    D_pad = _round_up(D, 128)
    w_out = params["w_out"]
    b_out = params["b_out"]
    if D_pad != D:
        w_out = jnp.pad(w_out, ((0, 0), (0, D_pad - D)))
        b_out = jnp.pad(b_out, ((0, 0), (0, D_pad - D)))

    inputs = [adj, x]
    in_specs = [
        pl.BlockSpec((TB, N, N), lambda g: (g, 0, 0)),
        pl.BlockSpec((TB, N, D), lambda g: (g, 0, 0)),
    ]
    for l in range(layers):
        w = params["layer_weights"][l]
        bias = params["layer_biases"][l]
        inputs += [w, bias]
        in_specs += [
            pl.BlockSpec(w.shape, lambda g: (0, 0)),
            pl.BlockSpec(bias.shape, lambda g: (0, 0)),
        ]
    inputs += [w_out, b_out]
    in_specs += [
        pl.BlockSpec(w_out.shape, lambda g: (0, 0)),
        pl.BlockSpec(b_out.shape, lambda g: (0, 0)),
    ]

    Dt = D + layers * h
    scratch_shapes = [
        pltpu.VMEM((TB, N, Dt), jnp.float32),   # feature cache [x | gAxW_*]
        pltpu.VMEM((TB, N, Dt), jnp.float32),   # adj @ cache blocks
    ]

    kernel = _make_dcgcn_kernel(layers, self_loop, D, h, TB, N, D_pad,
                                compute_dtype)

    # Advisory cost estimate (helps XLA schedule around the custom call).
    flops_adj = 2 * N * N * (D + (layers - 1) * h)
    flops_lin = sum(2 * N * (D + l * h) * h for l in range(layers))
    flops_out = 2 * N * D * D_pad
    flops = int(B * (flops_adj + flops_lin + flops_out))
    param_bytes = sum(int(p.size) for p in inputs[2:]) * 4
    bytes_accessed = int(4 * B * N * (N + D + D_pad) + param_bytes)
    cost = pl.CostEstimate(flops=flops, transcendentals=0,
                           bytes_accessed=bytes_accessed)

    out = pl.pallas_call(
        kernel,
        out_shape=jax.ShapeDtypeStruct((B, N, D_pad), x.dtype),
        grid_spec=pltpu.PrefetchScalarGridSpec(
            num_scalar_prefetch=0,
            grid=(B // TB,),
            in_specs=in_specs,
            out_specs=pl.BlockSpec((TB, N, D_pad), lambda g: (g, 0, 0)),
            scratch_shapes=scratch_shapes,
        ),
        compiler_params=pltpu.CompilerParams(
            dimension_semantics=("parallel",)),
        cost_estimate=cost,
    )(*inputs)

    if D_pad != D:
        out = out[:, :, :D]
    return out


def dcgcn_reference(adj, x, params, *, self_loop=True):
    """Pure-JAX reference, mirrors the PyTorch forward exactly (eval mode)."""
    denom = jnp.sum(adj, axis=2, keepdims=True) + 1.0
    outputs = x
    cache_list = [outputs]
    output_list = []
    for w, b in zip(params["layer_weights"], params["layer_biases"]):
        Ax = jnp.einsum("bij,bjd->bid", adj, outputs)
        AxW = Ax @ w + b
        if self_loop:
            AxW = AxW + outputs @ w + b
        AxW = AxW / denom
        gAxW = jax.nn.relu(AxW)
        cache_list.append(gAxW)
        outputs = jnp.concatenate(cache_list, axis=2)
        output_list.append(gAxW)
    g = jnp.concatenate(output_list, axis=2) + x
    return g @ params["w_out"] + params["b_out"]


def init_params(key, mem_dim, layers):
    assert mem_dim % layers == 0, "mem_dim must be divisible by layers"
    head_dim = mem_dim // layers
    keys = jax.random.split(key, 2 * layers + 2)
    layer_weights, layer_biases = [], []
    for l in range(layers):
        in_dim = mem_dim + head_dim * l
        # stored pre-transposed: [in_dim, head_dim] so the kernel does x @ w
        w = jax.random.normal(keys[2 * l], (in_dim, head_dim),
                              jnp.float32) * 0.05
        bias = jax.random.normal(keys[2 * l + 1], (1, head_dim),
                                 jnp.float32) * 0.01
        layer_weights.append(w)
        layer_biases.append(bias)
    w_out = jax.random.normal(keys[-2], (mem_dim, mem_dim), jnp.float32) * 0.05
    b_out = jax.random.normal(keys[-1], (1, mem_dim), jnp.float32) * 0.01
    return {
        "layer_weights": layer_weights,
        "layer_biases": layer_biases,
        "w_out": w_out,
        "b_out": b_out,
    }


def _run_case(seed, B, N, mem_dim, layers, self_loop, compute_dtype, atol, rtol):
    key = jax.random.fold_in(jax.random.PRNGKey(0), seed)
    k_adj, k_x, k_p = jax.random.split(key, 3)

    adj_raw = jax.random.uniform(k_adj, (B, N, N), jnp.float32)
    adj = (adj_raw > 0.7).astype(jnp.float32)
    x = jax.random.normal(k_x, (B, N, mem_dim), jnp.float32)
    params = init_params(k_p, mem_dim, layers)

    out = dcgcn_forward(adj, x, params, self_loop=self_loop,
                        compute_dtype=compute_dtype)
    out = jax.block_until_ready(out)

    ref = dcgcn_reference(adj, x, params, self_loop=self_loop)
    assert out.shape == (B, N, mem_dim)
    assert jnp.allclose(out, ref, atol=atol, rtol=rtol), (
        f"mismatch vs reference (case seed={seed})")


if __name__ == "__main__":
    # Original module-scale config, f32, strict tolerance.
    _run_case(0, B=2, N=16, mem_dim=32, layers=2,
              self_loop=True, compute_dtype=None, atol=1e-4, rtol=1e-4)
    # self_loop=False branch.
    _run_case(1, B=2, N=16, mem_dim=32, layers=2,
              self_loop=False, compute_dtype=None, atol=1e-4, rtol=1e-4)
    # Larger batch exercises TB>1 fusion (grid = 2 steps of 4 batch elems).
    _run_case(2, B=8, N=16, mem_dim=64, layers=4,
              self_loop=True, compute_dtype=None, atol=1e-4, rtol=1e-4)
    # bf16 MXU path (v6e/v7x optimization), looser tolerance.
    _run_case(3, B=8, N=16, mem_dim=64, layers=4,
              self_loop=True, compute_dtype=jnp.bfloat16, atol=5e-2, rtol=5e-2)

    print("KERNEL_OK")
</pallas_src>

<mosaic_0001>
module attributes {stable_mosaic.version = 11 : i64} {
  func.func @kernel(%arg0: i32, %arg1: memref<1x16x16xf32, #tpu.memory_space<vmem>>, %arg2: memref<1x16x32xf32, #tpu.memory_space<vmem>>, %arg3: memref<32x16xf32, #tpu.memory_space<vmem>>, %arg4: memref<1x16xf32, #tpu.memory_space<vmem>>, %arg5: memref<48x16xf32, #tpu.memory_space<vmem>>, %arg6: memref<1x16xf32, #tpu.memory_space<vmem>>, %arg7: memref<32x128xf32, #tpu.memory_space<vmem>>, %arg8: memref<1x128xf32, #tpu.memory_space<vmem>>, %arg9: memref<1x16x128xf32, #tpu.memory_space<vmem>>, %arg10: memref<1x16x64xf32, #tpu.memory_space<vmem>>, %arg11: memref<1x16x64xf32, #tpu.memory_space<vmem>>) attributes {dimension_semantics = [#tpu.dimension_semantics<parallel>], iteration_bounds = array<i64: 2>, scalar_prefetch = 0 : i64, scratch_operands = 2 : i64, tpu.core_type = #tpu.core_type<tc>, window_params = [{transform_indices = @transform_0, window_bounds = array<i64: 1, 16, 16>}, {transform_indices = @transform_1, window_bounds = array<i64: 1, 16, 32>}, {pipeline_mode = #tpu.pipeline_mode<synchronous>, transform_indices = @transform_2, window_bounds = array<i64: 32, 16>}, {pipeline_mode = #tpu.pipeline_mode<synchronous>, transform_indices = @transform_3, window_bounds = array<i64: 1, 16>}, {pipeline_mode = #tpu.pipeline_mode<synchronous>, transform_indices = @transform_4, window_bounds = array<i64: 48, 16>}, {pipeline_mode = #tpu.pipeline_mode<synchronous>, transform_indices = @transform_5, window_bounds = array<i64: 1, 16>}, {pipeline_mode = #tpu.pipeline_mode<synchronous>, transform_indices = @transform_6, window_bounds = array<i64: 32, 128>}, {pipeline_mode = #tpu.pipeline_mode<synchronous>, transform_indices = @transform_7, window_bounds = array<i64: 1, 128>}, {transform_indices = @transform_8, window_bounds = array<i64: 1, 16, 128>}]} {
    %c0 = arith.constant 0 : index
    %c0_0 = arith.constant 0 : index
    %c0_1 = arith.constant 0 : index
    %0 = vector.load %arg1[%c0, %c0_0, %c0_1] : memref<1x16x16xf32, #tpu.memory_space<vmem>>, vector<1x16x16xf32>
    %c0_2 = arith.constant 0 : index
    %c0_3 = arith.constant 0 : index
    %c0_4 = arith.constant 0 : index
    %1 = vector.load %arg2[%c0_2, %c0_3, %c0_4] : memref<1x16x32xf32, #tpu.memory_space<vmem>>, vector<1x16x32xf32>
    %cst = arith.constant dense<0.000000e+00> : vector<1x16xf32>
    %2 = vector.multi_reduction <add>, %0, %cst [2] : vector<1x16x16xf32> to vector<1x16xf32>
    %3 = vector.shape_cast %2 : vector<1x16xf32> to vector<1x16x1xf32>
    %cst_5 = arith.constant 1.000000e+00 : f32
    %4 = vector.broadcast %cst_5 : f32 to vector<1x16x1xf32>
    %5 = arith.addf %3, %4 : vector<1x16x1xf32>
    %cst_6 = arith.constant 1.000000e+00 : f32
    %6 = vector.broadcast %cst_6 : f32 to vector<1x16x1xf32>
    %7 = arith.divf %6, %5 : vector<1x16x1xf32>
    %c0_7 = arith.constant 0 : index
    %c0_8 = arith.constant 0 : index
    %c0_9 = arith.constant 0 : index
    %8 = vector.load %arg10[%c0_7, %c0_8, %c0_9] : memref<1x16x64xf32, #tpu.memory_space<vmem>>, vector<1x16x32xf32>
    tpu.vector_store %arg10[%c0_7, %c0_8, %c0_9], %1 {strides = array<i32>} : memref<1x16x64xf32, #tpu.memory_space<vmem>>, vector<1x16x32xf32>,
    "tpu.trace_start"() <{level = 10 : i32, message = "bij,bjd->bid"}> : () -> ()
    %cst_10 = arith.constant dense<0.000000e+00> : vector<1x16x32xf32>
    %9 = tpu.matmul %0, %1, %cst_10 {dimension_numbers = #tpu.dot_dimension_numbers<[2], [1], [1], [2], [0, 0, 0, 1, 1, 2], [0], [0]>} : vector<1x16x16xf32>, vector<1x16x32xf32>, vector<1x16x32xf32> -> vector<1x16x32xf32>
    "tpu.trace_stop"() : () -> ()
    %c0_11 = arith.constant 0 : index
    %c0_12 = arith.constant 0 : index
    %c0_13 = arith.constant 0 : index
    %10 = vector.load %arg11[%c0_11, %c0_12, %c0_13] : memref<1x16x64xf32, #tpu.memory_space<vmem>>, vector<1x16x32xf32>
    tpu.vector_store %arg11[%c0_11, %c0_12, %c0_13], %9 {strides = array<i32>} : memref<1x16x64xf32, #tpu.memory_space<vmem>>, vector<1x16x32xf32>,
    %c0_14 = arith.constant 0 : index
    %c0_15 = arith.constant 0 : index
    %11 = vector.load %arg3[%c0_14, %c0_15] : memref<32x16xf32, #tpu.memory_space<vmem>>, vector<32x16xf32>
    %c0_16 = arith.constant 0 : index
    %c0_17 = arith.constant 0 : index
    %12 = vector.load %arg4[%c0_16, %c0_17] : memref<1x16xf32, #tpu.memory_space<vmem>>, vector<1x16xf32>
    %c0_18 = arith.constant 0 : index
    %c0_19 = arith.constant 0 : index
    %c0_20 = arith.constant 0 : index
    %13 = vector.load %arg11[%c0_18, %c0_19, %c0_20] : memref<1x16x64xf32, #tpu.memory_space<vmem>>, vector<1x16x32xf32>
    %c0_21 = arith.constant 0 : index
    %c0_22 = arith.constant 0 : index
    %c0_23 = arith.constant 0 : index
    %14 = vector.load %arg10[%c0_21, %c0_22, %c0_23] : memref<1x16x64xf32, #tpu.memory_space<vmem>>, vector<1x16x32xf32>
    %15 = arith.addf %13, %14 : vector<1x16x32xf32>
    %cst_24 = arith.constant 2.000000e+00 : f32
    %16 = vector.broadcast %cst_24 : f32 to vector<1x16xf32>
    %17 = arith.mulf %16, %12 : vector<1x16xf32>
    %18 = vector.shape_cast %15 : vector<1x16x32xf32> to vector<16x32xf32>
    %cst_25 = arith.constant dense<0.000000e+00> : vector<16x16xf32>
    %19 = tpu.matmul %18, %11, %cst_25 {dimension_numbers = #tpu.dot_dimension_numbers<[1], [0], [0], [1], [0, 0, 1, 1], [], []>} : vector<16x32xf32>, vector<32x16xf32>, vector<16x16xf32> -> vector<16x16xf32>
    %20 = vector.broadcast %17 : vector<1x16xf32> to vector<16x16xf32>
    %21 = arith.addf %19, %20 : vector<16x16xf32>
    %22 = vector.shape_cast %21 : vector<16x16xf32> to vector<1x16x16xf32>
    %23 = vector.broadcast %7 : vector<1x16x1xf32> to vector<1x16x16xf32>
    %24 = arith.mulf %22, %23 : vector<1x16x16xf32>
    %cst_26 = arith.constant 0.000000e+00 : f32
    %25 = vector.broadcast %cst_26 : f32 to vector<1x16x16xf32>
    %26 = arith.maximumf %24, %25 : vector<1x16x16xf32>
    %c0_27 = arith.constant 0 : index
    %c0_28 = arith.constant 0 : index
    %c32 = arith.constant 32 : index
    %27 = vector.load %arg10[%c0_27, %c0_28, %c32] : memref<1x16x64xf32, #tpu.memory_space<vmem>>, vector<1x16x16xf32>
    tpu.vector_store %arg10[%c0_27, %c0_28, %c32], %26 {strides = array<i32>} : memref<1x16x64xf32, #tpu.memory_space<vmem>>, vector<1x16x16xf32>,
    "tpu.trace_start"() <{level = 10 : i32, message = "bij,bjd->bid"}> : () -> ()
    %cst_29 = arith.constant dense<0.000000e+00> : vector<1x16x16xf32>
    %28 = tpu.matmul %0, %26, %cst_29 {dimension_numbers = #tpu.dot_dimension_numbers<[2], [1], [1], [2], [0, 0, 0, 1, 1, 2], [0], [0]>} : vector<1x16x16xf32>, vector<1x16x16xf32>, vector<1x16x16xf32> -> vector<1x16x16xf32>
    "tpu.trace_stop"() : () -> ()
    %c0_30 = arith.constant 0 : index
    %c0_31 = arith.constant 0 : index
    %c32_32 = arith.constant 32 : index
    %29 = vector.load %arg11[%c0_30, %c0_31, %c32_32] : memref<1x16x64xf32, #tpu.memory_space<vmem>>, vector<1x16x16xf32>
    tpu.vector_store %arg11[%c0_30, %c0_31, %c32_32], %28 {strides = array<i32>} : memref<1x16x64xf32, #tpu.memory_space<vmem>>, vector<1x16x16xf32>,
    %c0_33 = arith.constant 0 : index
    %c0_34 = arith.constant 0 : index
    %30 = vector.load %arg5[%c0_33, %c0_34] : memref<48x16xf32, #tpu.memory_space<vmem>>, vector<48x16xf32>
    %c0_35 = arith.constant 0 : index
    %c0_36 = arith.constant 0 : index
    %31 = vector.load %arg6[%c0_35, %c0_36] : memref<1x16xf32, #tpu.memory_space<vmem>>, vector<1x16xf32>
    %c0_37 = arith.constant 0 : index
    %c0_38 = arith.constant 0 : index
    %c0_39 = arith.constant 0 : index
    %32 = vector.load %arg11[%c0_37, %c0_38, %c0_39] : memref<1x16x64xf32, #tpu.memory_space<vmem>>, vector<1x16x48xf32>
    %c0_40 = arith.constant 0 : index
    %c0_41 = arith.constant 0 : index
    %c0_42 = arith.constant 0 : index
    %33 = vector.load %arg10[%c0_40, %c0_41, %c0_42] : memref<1x16x64xf32, #tpu.memory_space<vmem>>, vector<1x16x48xf32>
    %34 = arith.addf %32, %33 : vector<1x16x48xf32>
    %cst_43 = arith.constant 2.000000e+00 : f32
    %35 = vector.broadcast %cst_43 : f32 to vector<1x16xf32>
    %36 = arith.mulf %35, %31 : vector<1x16xf32>
    %37 = vector.shape_cast %34 : vector<1x16x48xf32> to vector<16x48xf32>
    %cst_44 = arith.constant dense<0.000000e+00> : vector<16x16xf32>
    %38 = tpu.matmul %37, %30, %cst_44 {dimension_numbers = #tpu.dot_dimension_numbers<[1], [0], [0], [1], [0, 0, 1, 1], [], []>} : vector<16x48xf32>, vector<48x16xf32>, vector<16x16xf32> -> vector<16x16xf32>
    %39 = vector.broadcast %36 : vector<1x16xf32> to vector<16x16xf32>
    %40 = arith.addf %38, %39 : vector<16x16xf32>
    %41 = vector.shape_cast %40 : vector<16x16xf32> to vector<1x16x16xf32>
    %42 = vector.broadcast %7 : vector<1x16x1xf32> to vector<1x16x16xf32>
    %43 = arith.mulf %41, %42 : vector<1x16x16xf32>
    %cst_45 = arith.constant 0.000000e+00 : f32
    %44 = vector.broadcast %cst_45 : f32 to vector<1x16x16xf32>
    %45 = arith.maximumf %43, %44 : vector<1x16x16xf32>
    %c0_46 = arith.constant 0 : index
    %c0_47 = arith.constant 0 : index
    %c48 = arith.constant 48 : index
    %46 = vector.load %arg10[%c0_46, %c0_47, %c48] : memref<1x16x64xf32, #tpu.memory_space<vmem>>, vector<1x16x16xf32>
    tpu.vector_store %arg10[%c0_46, %c0_47, %c48], %45 {strides = array<i32>} : memref<1x16x64xf32, #tpu.memory_space<vmem>>, vector<1x16x16xf32>,
    %c0_48 = arith.constant 0 : index
    %c0_49 = arith.constant 0 : index
    %c32_50 = arith.constant 32 : index
    %47 = vector.load %arg10[%c0_48, %c0_49, %c32_50] : memref<1x16x64xf32, #tpu.memory_space<vmem>>, vector<1x16x32xf32>
    %48 = arith.addf %47, %1 : vector<1x16x32xf32>
    %49 = vector.shape_cast %48 : vector<1x16x32xf32> to vector<16x32xf32>
    %c0_51 = arith.constant 0 : index
    %c0_52 = arith.constant 0 : index
    %50 = vector.load %arg7[%c0_51, %c0_52] : memref<32x128xf32, #tpu.memory_space<vmem>>, vector<32x128xf32>
    %cst_53 = arith.constant dense<0.000000e+00> : vector<16x128xf32>
    %51 = tpu.matmul %49, %50, %cst_53 {dimension_numbers = #tpu.dot_dimension_numbers<[1], [0], [0], [1], [0, 0, 1, 1], [], []>} : vector<16x32xf32>, vector<32x128xf32>, vector<16x128xf32> -> vector<16x128xf32>
    %c0_54 = arith.constant 0 : index
    %c0_55 = arith.constant 0 : index
    %52 = vector.load %arg8[%c0_54, %c0_55] : memref<1x128xf32, #tpu.memory_space<vmem>>, vector<1x128xf32>
    %53 = vector.broadcast %52 : vector<1x128xf32> to vector<16x128xf32>
    %54 = arith.addf %51, %53 : vector<16x128xf32>
    %55 = vector.shape_cast %54 : vector<16x128xf32> to vector<1x16x128xf32>
    %c0_56 = arith.constant 0 : index
    %c0_57 = arith.constant 0 : index
    %c0_58 = arith.constant 0 : index
    %56 = vector.load %arg9[%c0_56, %c0_57, %c0_58] : memref<1x16x128xf32, #tpu.memory_space<vmem>>, vector<1x16x128xf32>
    tpu.vector_store %arg9[%c0_56, %c0_57, %c0_58], %55 {strides = array<i32>} : memref<1x16x128xf32, #tpu.memory_space<vmem>>, vector<1x16x128xf32>,
    return
  }
  func.func @transform_0(%arg0: i32) -> (i32, i32, i32) {
    %c0_i32 = arith.constant 0 : i32
    %c0_i32_0 = arith.constant 0 : i32
    %c0_i32_1 = arith.constant 0 : i32
    return %arg0, %c0_i32, %c0_i32_0 : i32, i32, i32
  }
  func.func @transform_1(%arg0: i32) -> (i32, i32, i32) {
    %c0_i32 = arith.constant 0 : i32
    %c0_i32_0 = arith.constant 0 : i32
    %c0_i32_1 = arith.constant 0 : i32
    return %arg0, %c0_i32, %c0_i32_0 : i32, i32, i32
  }
  func.func @transform_2(%arg0: i32) -> (i32, i32) {
    %c0_i32 = arith.constant 0 : i32
    %c0_i32_0 = arith.constant 0 : i32
    %c0_i32_1 = arith.constant 0 : i32
    return %c0_i32, %c0_i32_0 : i32, i32
  }
  func.func @transform_3(%arg0: i32) -> (i32, i32) {
    %c0_i32 = arith.constant 0 : i32
    %c0_i32_0 = arith.constant 0 : i32
    %c0_i32_1 = arith.constant 0 : i32
    return %c0_i32, %c0_i32_0 : i32, i32
  }
  func.func @transform_4(%arg0: i32) -> (i32, i32) {
    %c0_i32 = arith.constant 0 : i32
    %c0_i32_0 = arith.constant 0 : i32
    %c0_i32_1 = arith.constant 0 : i32
    return %c0_i32, %c0_i32_0 : i32, i32
  }
  func.func @transform_5(%arg0: i32) -> (i32, i32) {
    %c0_i32 = arith.constant 0 : i32
    %c0_i32_0 = arith.constant 0 : i32
    %c0_i32_1 = arith.constant 0 : i32
    return %c0_i32, %c0_i32_0 : i32, i32
  }
  func.func @transform_6(%arg0: i32) -> (i32, i32) {
    %c0_i32 = arith.constant 0 : i32
    %c0_i32_0 = arith.constant 0 : i32
    %c0_i32_1 = arith.constant 0 : i32
    return %c0_i32, %c0_i32_0 : i32, i32
  }
  func.func @transform_7(%arg0: i32) -> (i32, i32) {
    %c0_i32 = arith.constant 0 : i32
    %c0_i32_0 = arith.constant 0 : i32
    %c0_i32_1 = arith.constant 0 : i32
    return %c0_i32, %c0_i32_0 : i32, i32
  }
  func.func @transform_8(%arg0: i32) -> (i32, i32, i32) {
    %c0_i32 = arith.constant 0 : i32
    %c0_i32_0 = arith.constant 0 : i32
    %c0_i32_1 = arith.constant 0 : i32
    return %arg0, %c0_i32, %c0_i32_0 : i32, i32, i32
  }
}

</mosaic_0001>

<bundles_post_ra>
// kernel: tpu_custom_call.1
= control target key start
LH: loop header
LB: loop body
LE: loop exit
PB: predicated region body
PF: predicated region fallthrough
CT: control target
= control target key end

     0   :  { %13 = vsyncpa [#allocation5], 0  ;;  %s1441_s0 = inlined_call_operand.vmem [shape: f32[2,16,16], index: 0, kind: input, shape index: {}]   ;;  %s1442_s1 = inlined_call_operand.vmem [shape: f32[2,16,32], index: 1, kind: input, shape index: {}]   ;;  %s1443_s2 = inlined_call_operand.vmem [shape: f32[32,16], index: 2, kind: input, shape index: {}]   ;;  %s1444_s3 = inlined_call_operand.vmem [shape: f32[1,16], index: 3, kind: input, shape index: {}]   ;;  %s1445_s4 = inlined_call_operand.vmem [shape: f32[48,16], index: 4, kind: input, shape index: {}]   ;;  %s1446_s5 = inlined_call_operand.vmem [shape: f32[1,16], index: 5, kind: input, shape index: {}]   ;;  %s1447_s6 = inlined_call_operand.vmem [shape: f32[32,128], index: 6, kind: input, shape index: {}]   ;;  %s1448_s7 = inlined_call_operand.vmem [shape: f32[1,128], index: 7, kind: input, shape index: {}]   ;;  %s1449_s8 = inlined_call_operand.hbm [shape: f32[2,16,128], index: 8, kind: output, shape index: {}]  }
   0x1   :  { %15 = vsyncpa [#allocation5 + $0x1], 0  ;;  %s1247_s27 = smov 0   ;;  %s1249_s28 = smov 0  }
   0x2   :  { %s1251_s29 = smov 0   ;;  %s1253_s30 = smov 0  }
   0x3 LB: > { %s1268_s9 = sadd.s32 4294967295, %s1194_s30   ;;  %s941_s10 = sadd.s32 4294967294, %s1194_s30   ;;  %s1194_s30 = sphi %s1253_s30, %s1455_s30   ;;  %s1190_s29 = sphi %s1251_s29, %s1454_s29   ;;  %s1186_s28 = sphi %s1249_s28, %s1453_s28   ;;  %s1182_s27 = sphi %s1247_s27, %s1452_s27  }
   0x4   : > { %s1272_s11 = sadd.s32 1, %s1194_s30   ;;  %s206_s12 = sadd.s32 1, %s1190_s29 }
   0x5   : > { %s203_s13 = ssub.s32 %s1194_s30, %s1272_s11  ;;  %p216_p0 = scmp.ne.s32.totalorder %s1190_s29, %s1186_s28 }
   0x6   : > { %p204_p1 = scmp.eq.s32.totalorder %s203_s13, 0  ;;  %p217_p2 = scmp.eq.s32.totalorder %s1268_s9, 1 }
   0x7   : > { %p222_p3 = scmp.ne.s32.totalorder %s1186_s28, %s1182_s27  ;;  %p223_p4 = scmp.eq.s32.totalorder %s941_s10, 1 }
   0x8   : > { %s1283_s14 = scalar_select %p204_p1, %s1190_s29, %s206_s12  }
   0x9   : > { %p1285_p5 = por %p217_p2, %p216_p0  ;;  %p1289_p6 = por %p223_p4, %p222_p3 }
   0xa   : > { %p944_p7 = scmp.ge.s32.totalorder %s1194_s30, 1  ;;  %p275_p8 = scmp.lt.s32.totalorder %s1194_s30, 3 }
   0xc   : > { %p276_p9 = pnand %p944_p7, %p275_p8 }
   0xd   : > { %p314_p10 = scmp.lt.s32.totalorder (!%p276_p9), %s1268_s9, 1  ;;  %vm341_vm0 = vcmask (!%p276_p9), 261120   ;;  %vm328_vm1 = vcmask (!%p276_p9), 130048   ;;  %v427_v5 = vld [vmem:[%s1443_s2] sm:$0xff] (!%p276_p9)  ;;  %v428_v6 = vld [vmem:[%s1443_s2 + $0x8] sm:$0xff] (!%p276_p9)  ;;  %v429_v7 = vld [vmem:[%s1443_s2 + $0x10] sm:$0xff] (!%p276_p9)  ;;  %v440_v23 = vlaneseq (!%p276_p9) }
   0xe   : > { %279 = sbr.rel (%p276_p9) target bundleno = 1516 (0x5ec), region = 52  ;;  %v1052_v8 = vpack.c.bf16 (!%p276_p9), %v428_v6, %v427_v5  ;;  %v430_v9 = vld [vmem:[%s1443_s2 + $0x18] sm:$0xff] (!%p276_p9)  ;;  %v431_v27 = vld [vmem:[%s1444_s3] sm:$0x1] (!%p276_p9)  ;;  %s1196_s22 = smov (!%p276_p9), 32   ;;  %vm538_vm2 = vcmask (!%p276_p9), 392448  }
   0xf   : > { %v1056_v10 = vpack.c.bf16 (!%p276_p9), %v430_v9, %v429_v7  ;;  %v1334_v26 = vshrl.u32 (!%p276_p9), %v440_v23, 7  ;;  %v438_v28 = vmul.f32 (!%p276_p9), 2.0, %v431_v27  ;;  %v626_v44 = vld [vmem:[%s1445_s4] sm:$0xff] (!%p276_p9)  ;;  %v627_v45 = vld [vmem:[%s1445_s4 + $0x8] sm:$0xff] (!%p276_p9)  ;;  %v628_v47 = vld [vmem:[%s1445_s4 + $0x10] sm:$0xff] (!%p276_p9)  ;;  %vm646_vm3 = vcmask (!%p276_p9), 392192  }
  0x10   : > { %1053 = vmatprep.subr.bf16.mxu1 (!%p276_p9), %v1052_v8  ;;  %v1064_v46 = vpack.c.bf16 (!%p276_p9), %v627_v45, %v626_v44  ;;  %v629_v48 = vld [vmem:[%s1445_s4 + $0x18] sm:$0xff] (!%p276_p9)  ;;  %v630_v50 = vld [vmem:[%s1445_s4 + $0x20] sm:$0xff] (!%p276_p9)  ;;  %v631_v51 = vld [vmem:[%s1445_s4 + $0x28] sm:$0xff] (!%p276_p9)  ;;  %s1197_s25 = smov (!%p276_p9), 48   ;;  %vm740_vm4 = vcmask (!%p276_p9), 523648   ;;  %s968_s12 = sshll.u32 (!%p276_p9), %s1268_s9, 8 }
  0x11   : > { %1055 = vmatpush3.bf16.msra.mxu1 (!%p276_p9), %v1052_v8  ;;  %v442_v29 = vsub.s32 (!%p276_p9), 0, %v1334_v26  ;;  %v1068_v49 = vpack.c.bf16 (!%p276_p9), %v629_v48, %v628_v47  ;;  %v1072_v52 = vpack.c.bf16 (!%p276_p9), %v631_v51, %v630_v50  ;;  %v632_v63 = vld [vmem:[%s1446_s5] sm:$0x1] (!%p276_p9) }
  0x12   : > { %1057 = vmatprep.subr.bf16.mxu1 (!%p276_p9), %v1056_v10  ;;  %v958_v26 = vld [vmem:[%s1448_s7] ss:$0 sm:$0xff] (!%p276_p9) }
  0x13   : > { %v443_v30 = vrot.slane (!%p276_p9), %v438_v28, %v442_v29 }
  0x15   : > { %s315_s17 = scalar_select %p314_p10, %s1268_s9, 1  ;;  %1059 = vmatpush3.bf16.msra.mxu1 %v1056_v10 }
  0x16   : > { %s1199_s9 = smov [#allocation4]  }
  0x17   : > { %s966_s18 = sshll.u32 %s315_s17, 4 }
  0x18   : > { %s323_s21 = scalar_lea.vmem %s1442_s1, %s966_s18  ;;  %s318_s24 = scalar_lea.vmem %s1441_s0, %s966_s18 }
  0x19   : > { %v1303_v0 = vld [vmem:[%s323_s21] sm:$0xff]  ;;  %v1305_v1 = vld [vmem:[%s323_s21 + $0x8] sm:$0xff]  ;;  %s311_s21 = sand.u32 1, %s1186_s28   ;;  %s1398_s18 = scalar_lea.hbm %s1449_s8, %s968_s12 }
  0x1a   : > { %v324_v2 = vld [vmem:[%s318_s24] sm:$0xff]  ;;  %342 = vst.msk [vmem:[#allocation2] sm:$0xff] %vm341_vm0, %v1303_v0  ;;  %343 = vst.msk [vmem:[#allocation2 + $0x8] sm:$0xff] %vm341_vm0, %v1305_v1  ;;  %v1048_v3 = vpack.c.bf16 %v1305_v1, %v1303_v0  ;;  %v325_v4 = vld [vmem:[%s318_s24 + $0x8] sm:$0xff]  ;;  %s945_s23 = sshll.u32 %s311_s21, 4  ;;  %s1400_s19 = scalar_lea.sflag [#allocation5], %s311_s21 }
  0x1b   : > { %1001 = vmatprep.mubr.msk.f32.mxu0 %vm328_vm1, %v324_v2  ;;  %v329_v11 = vsel %vm328_vm1, %v324_v2, 0.0  ;;  %v332_v12 = vsel %vm328_vm1, %v325_v4, 0.0  ;;  %s313_s26 = scalar_lea.vmem [#allocation4], %s945_s23 }
  0x1c   : > { %1049 = vmatprep.subr.bf16.mxu0 %v1048_v3  ;;  %330 = vadd.xlane.f32.xlu0 %v329_v11  ;;  %v755_v11 = vld [vmem:[%s1447_s6] sm:$0xff]  ;;  %s867_s10 = sshll.u32 %s313_s26, 4  ;;  %s1393_s10 = int_to_ptr.vmem [resolvable:$true] %s867_s10 }
  0x1d   : > { %1051 = vmatpush3.bf16.msra.mxu0 %v1048_v3  ;;  %s1132_s20 = scalar_lea.vmem %s1393_s10, 256 }
  0x1e   : > { %p1133_p11 = scmp.ne.s32.totalorder %s1393_s10, %s1132_s20 }
  0x20   : > { %1002 = vmatmul.mubr.msk.f32.vlgmr.msra.gmra.mrb[0].mxu0 %vm328_vm1, %v325_v4  ;;  %333 = vadd.xlane.f32.xlu0 %v332_v12  ;;  %v756_v12 = vld [vmem:[%s1447_s6 + $0x8] sm:$0xff]  ;;  %p1134_p12 = pnand %p1133_p11, %p1285_p5 }
  0x21   : > { %1019 = vmatprep.mubr.msk.f32.mxu0 %vm328_vm1, %v324_v2  ;;  %v434_v15 = vld [vmem:[#allocation2] sm:$0xff]  ;;  %v435_v17 = vld [vmem:[#allocation2 + $0x8] sm:$0xff]  ;;  %v639_v2 = vmul.f32 2.0, %v632_v63 }
  0x22   : > { %p1135_p13 = pneg %p1134_p12 }
  0x23   : > { %v644_v3 = vrot.slane %v639_v2, %v442_v29 }
  0xa9   : > { %v331_v21 = vpop.xlane.xlu0 %330 }
  0xaa   : > { %v335_v25 = vadd.f32 1.0, %v331_v21 }
  0xad   : > { %v334_v22 = vpop.xlane.xlu0 %333 }
  0xae   : > { %v336_v24 = vadd.f32 1.0, %v334_v22 }
  0xb0   : > { %1128 = vrcp.f32 %v336_v24 }
  0xb1   : > { %1130 = vrcp.f32 %v335_v25 }
  0xba   : > { %v1129_v31 = vpop.eup %1128 }
  0xbb   : > { %v1131_v36 = vpop.eup %1130 }
  0xf3   : > { %v1003_v13 = vpop.f32.mrb[0].mxu0 }
  0xf4   : > { %426 = vst.msk [vmem:[#allocation3 + $0x8] sm:$0xff] %vm341_vm0, %v1003_v13  ;;  %v416_v14 = vpop.f32.mrb[1].mxu0 }
  0xf5   : > { %425 = vst.msk [vmem:[#allocation3] sm:$0xff] %vm341_vm0, %v416_v14  ;;  %v1076_v14 = vpack.c.bf16 %v756_v12, %v755_v11 }
  0xf7   : > { %1077 = vmatprep.subr.bf16.mxu1 %v1076_v14 }
  0xfb   : > { %v433_v16 = vld [vmem:[#allocation3 + $0x8] sm:$0xff] }
  0xfc   : > { %v432_v18 = vld [vmem:[#allocation3] sm:$0xff]  ;;  %v437_v20 = vadd.f32 %v435_v17, %v433_v16  ;;  %v758_v16 = vld [vmem:[%s1447_s6 + $0x18] sm:$0xff] }
  0xfd   : > { %v436_v19 = vadd.f32 %v434_v15, %v432_v18  ;;  %v757_v15 = vld [vmem:[%s1447_s6 + $0x10] sm:$0xff] }
  0xfe   : > { %v1080_v17 = vpack.c.bf16 %v758_v16, %v757_v15 }
  0xff   : > { %1012 = vmatprep.mubr.msk.f32.mxu1 %vm341_vm0, %v436_v19 }
 0x100   : > { %1013 = vmatmul.mubr.msk.f32.vlgmr.msra.gmra.mrb[0].mxu1 %vm341_vm0, %v437_v20 }
 0x101   : > { %1079 = vmatpush3.bf16.msra.mxu1 %v1076_v14 }
 0x102   : > { %1081 = vmatprep.subr.bf16.mxu1 %v1080_v17 }
 0x105   : > { %1083 = vmatpush3.bf16.msra.mxu1 %v1080_v17 }
 0x1d3   : > { %v1014_v32 = vpop.f32.mrb[0].mxu1 }
 0x1d4   : > { %v523_v33 = vadd.f32 %v1014_v32, %v443_v30  ;;  %v517_v34 = vpop.f32.mrb[1].mxu1 }
 0x1d5   : > { %v518_v35 = vadd.f32 %v517_v34, %v443_v30 }
 0x1d6   : > { %v527_v37 = vmul.f32 %v1129_v31, %v523_v33 }
 0x1d7   : > { %v526_v38 = vmul.f32 %v1131_v36, %v518_v35 }
 0x1d8   : > { %v529_v39 = vmax.f32 %v527_v37, 0.0 }
 0x1d9   : > { %v528_v40 = vmax.f32 %v526_v38, 0.0 }
 0x1da   : > { %534 = vrot.lane.b32.xlu0 %v529_v39, %s1196_s22 }
 0x1db   : > { %532 = vrot.lane.b32.xlu1 %v528_v40, %s1196_s22  ;;  %v1060_v41 = vpack.c.bf16 %v529_v39, %v528_v40 }
 0x1dd   : > { %1061 = vmatprep.subr.bf16.mxu0 %v1060_v41 }
 0x1de   : > { %1063 = vmatpush3.bf16.msra.mxu0 %v1060_v41 }
 0x1df   : > { %1065 = vmatprep.subr.bf16.mxu0 %v1064_v46 }
 0x1e1   : > { %1020 = vmatmul.mubr.msk.f32.vlgmr.msra.gmra.mrb[2].mxu0 %vm328_vm1, %v325_v4 }
 0x1e2   : > { %1067 = vmatpush3.bf16.msra.mxu0 %v1064_v46 }
 0x1e3   : > { %1069 = vmatprep.subr.bf16.mxu0 %v1068_v49 }
 0x1e6   : > { %1071 = vmatpush3.bf16.msra.mxu0 %v1068_v49 }
 0x1e7   : > { %1073 = vmatprep.subr.bf16.mxu0 %v1072_v52 }
 0x1ea   : > { %1075 = vmatpush3.bf16.msra.mxu0 %v1072_v52 }
 0x24c   : > { %v535_v42 = vpop.permute.xlu0 %534 }
 0x24d   : > { %540 = vst.msk [vmem:[#allocation2 + $0x8] sm:$0xff] %vm538_vm2, %v535_v42  ;;  %v533_v43 = vpop.permute.xlu1 %532 }
 0x24e   : > { %539 = vst.msk [vmem:[#allocation2] sm:$0xff] %vm538_vm2, %v533_v43 }
 0x254   : > { %v636_v61 = vld [vmem:[#allocation2 + $0x8] sm:$0xff] }
 0x255   : > { %v635_v58 = vld [vmem:[#allocation2] sm:$0xff] }
 0x2b4   : > { %v1021_v53 = vpop.f32.mrb[2].mxu0 }
 0x2b5   : > { %v607_v54 = vpop.f32.mrb[3].mxu0 }
 0x2b6   : > { %618 = vrot.lane.b32.xlu1 %v607_v54, %s1196_s22 }
 0x2ba   : > { %620 = vrot.lane.b32.xlu1 %v1021_v53, %s1196_s22 }
 0x328   : > { %v619_v55 = vpop.permute.xlu1 %618 }
 0x329   : > { %624 = vst.msk [vmem:[#allocation3] sm:$0xff] %vm538_vm2, %v619_v55 }
 0x32c   : > { %v621_v56 = vpop.permute.xlu1 %620 }
 0x32d   : > { %625 = vst.msk [vmem:[#allocation3 + $0x8] sm:$0xff] %vm538_vm2, %v621_v56 }
 0x330   : > { %v633_v57 = vld [vmem:[#allocation3] sm:$0xff] }
 0x331   : > { %v637_v59 = vadd.f32 %v635_v58, %v633_v57 }
 0x333   : > { %1034 = vmatprep.mubr.msk.f32.mxu0 %vm646_vm3, %v637_v59 }
 0x334   : > { %v634_v60 = vld [vmem:[#allocation3 + $0x8] sm:$0xff] }
 0x335   : > { %v638_v62 = vadd.f32 %v636_v61, %v634_v60 }
 0x337   : > { %1035 = vmatmul.mubr.msk.f32.vlgmr.msra.gmra.mrb[4].mxu0 %vm646_vm3, %v638_v62 }
 0x40a   : > { %v1036_v4 = vpop.f32.mrb[4].mxu0 }
 0x40b   : > { %v719_v5 = vpop.f32.mrb[5].mxu0  ;;  %v725_v6 = vadd.f32 %v1036_v4, %v644_v3 }
 0x40c   : > { %v720_v7 = vadd.f32 %v719_v5, %v644_v3 }
 0x40d   : > { %v729_v9 = vmul.f32 %v1129_v31, %v725_v6 }
 0x40e   : > { %v728_v8 = vmul.f32 %v1131_v36, %v720_v7 }
 0x40f   : > { %v731_v13 = vmax.f32 %v729_v9, 0.0 }
 0x410   : > { %v730_v10 = vmax.f32 %v728_v8, 0.0 }
 0x412   : > { %734 = vrot.lane.b32.xlu1 %v730_v10, %s1197_s25 }
 0x416   : > { %736 = vrot.lane.b32.xlu1 %v731_v13, %s1197_s25 }
 0x41a   : > { %747 = vrot.lane.b32.xlu1 %v1303_v0, %s1196_s22 }
 0x41e   : > { %749 = vrot.lane.b32.xlu1 %v1305_v1, %s1196_s22  ;;  %s1198_s22 = smov 96  }
 0x484   : > { %v735_v18 = vpop.permute.xlu1 %734 }
 0x485   : > { %741 = vst.msk [vmem:[#allocation2] sm:$0xff] %vm740_vm4, %v735_v18 }
 0x488   : > { %v737_v19 = vpop.permute.xlu1 %736 }
 0x489   : > { %742 = vst.msk [vmem:[#allocation2 + $0x8] sm:$0xff] %vm740_vm4, %v737_v19 }
 0x48c   : > { %v743_v0 = vld [vmem:[#allocation2] sm:$0xff]  ;;  %v748_v20 = vpop.permute.xlu1 %747 }
 0x48d   : > { %v753_v1 = vadd.f32 %v748_v20, %v743_v0 }
 0x48f   : > { %768 = vrot.lane.b32.xlu1 %v753_v1, %s1198_s22 }
 0x490   : > { %v744_v21 = vld [vmem:[#allocation2 + $0x8] sm:$0xff]  ;;  %v750_v22 = vpop.permute.xlu1 %749 }
 0x491   : > { %v754_v23 = vadd.f32 %v750_v22, %v744_v21 }
 0x493   : > { %770 = vrot.lane.b32.xlu0 %v754_v23, %s1198_s22  ;;  %s1136_s22 = sshll.u32 %s1199_s9, 4  ;;  %s1137_s22 = int_to_ptr.vmem [resolvable:$false] %s1136_s22 }
 0x494   : > { %s1138_s23 = scalar_lea.vmem %s1137_s22, 512  ;;  %p1139_p0 = scmp.lt.s32.totalorder %s1393_s10, %s1137_s22 }
 0x495   : > { %p1140_p1 = scmp.lt.s32.totalorder %s1138_s23, %s1132_s20 }
 0x497   : > { %p1141_p2 = por %p1140_p1, %p1139_p0 }
 0x499   : > { %p1142_p3 = pnand %p1141_p2, %p1135_p13 }
 0x501   : > { %v769_v24 = vpop.permute.xlu1 %768 }
 0x502   : > { %1045 = vmatprep.mubr.msk.f32.mxu1 %vm341_vm0, %v769_v24 }
 0x505   : > { %v771_v25 = vpop.permute.xlu0 %770 }
 0x506   : > { %1046 = vmatmul.mubr.msk.f32.vlgmr.msra.gmra.mrb[2].mxu1 %vm341_vm0, %v771_v25 }
 0x5d9   : > { %v1047_v27 = vpop.f32.mrb[2].mxu1 }
 0x5da   : > { %v848_v28 = vadd.f32 %v1047_v27, %v958_v26  ;;  %v842_v29 = vpop.f32.mrb[3].mxu1 }
 0x5db   : > { %v843_v30 = vadd.f32 %v958_v26, %v842_v29 }
 0x5dc   : > { %852 = vst [vmem:[%s313_s26 + $0x8] sm:$0xff] %v848_v28 }
 0x5dd   : > { %851 = vst [vmem:[%s313_s26] sm:$0xff] %v843_v30 }
 0x5de   : > { %1145 = shalt.err (!%p1142_p3)
}
 0x5df   : > { %s1146_s21 = scalar_lea.hbm %s1398_s18, 256  ;;  %s1150_s26 = scalar_lea.hbm %s1449_s8, 512 }
 0x5e0   : > { %p1147_p4 = scmp.ne.s32.totalorder %s1398_s18, %s1146_s21  ;;  %p1151_p9 = scmp.lt.u32.totalorder %s1398_s18, %s1449_s8 }
 0x5e1   : > { %p1152_p10 = scmp.lt.u32.totalorder %s1150_s26, %s1146_s21  ;;  %p1154_p12 = scmp.lt.u32.totalorder %s1146_s21, %s1398_s18 }
 0x5e2   : > { %p1148_p7 = pnand %p1147_p4, %p1285_p5 }
 0x5e3   : > { %p1153_p11 = por %p1152_p10, %p1151_p9 }
 0x5e4   : > { %p1149_p8 = pneg %p1148_p7 }
 0x5e5   : > { %p1155_p13 = por %p1154_p12, %p1153_p11 }
 0x5e7   : > { %p1156_p0 = pnand %p1155_p13, %p1149_p8 }
 0x5e9   : > { %1159 = shalt.err (!%p1156_p0)
}
 0x5ea   : > { %s1200_s17 = smov 128   ;;  %s1201_s20 = smov 8  }
 0x5eb   : > { %1084 = dma.vmem_to_hbm [thread:$0]  (%p1285_p5), %s1393_s10, 256, %s1398_s18, %s1400_s19, %s1200_s17, %s1200_s17, %s1201_s20  }
 0x5ec PF: > { %p1090_p1 = scmp.ge.s32.totalorder %s1194_s30, 2  ;;  %s882_s9 = sand.u32 1, %s1182_s27  }
 0x5ed   : > { %s883_s22 = scalar_lea.sflag [#allocation5], %s882_s9 }
 0x5ee   : > { %p1087_p2 = pnand %p1090_p1, %p1289_p6 }
 0x5f0   : > { %1177 = dma.done.wait (!%p1087_p2), %s883_s22, 256  }
 0x5f1   : > { %1179 = vsyncadd (!%p1087_p2), %s883_s22, 4294967040  ;;  %p18_p3 = scmp.ge.s32.totalorder %s1272_s11, 4   ;;  %s1452_s27 = smov %s1186_s28 }
 0x5f2   : > { %s1453_s28 = smov %s1190_s29  ;;  %s1454_s29 = smov %s1283_s14 }
 0x5f3   : > { %s1455_s30 = smov %s1272_s11  ;;  %20 = sbr.rel (!%p18_p3) target bundleno = 3 (0x3), region = 90 }
 0x5fa   :  { %888 = vsyncpa [#allocation5], 1 }
 0x5fb   :  { %890 = vsyncpa [#allocation5 + $0x1], 1 }

</bundles_post_ra>
